<compile_context>
chip_gen: v5e
topology: v5e:2x2
jax: 0.10.0
libtpu: 0.0.40
codegen_flags: <defaults>
</compile_context>

<pallas_src>
import jax
import jax.numpy as jnp
from jax.experimental import pallas as pl
from jax.experimental.pallas import tpu as pltpu

N_FEATURE = 14
N_HIDDEN1 = 20
N_HIDDEN2 = 12
N_OUTPUT = 4

LANE = 128
TILE_B_MAX = 32768  # default lane-tile budget; <10 MiB VMEM in the transposed layout


def _round_up(n, m):
    return ((n + m - 1) // m) * m


def _mlp_softmax_kernel(x_ref, w1_ref, b1_ref, w2_ref, b2_ref, w3_ref, b3_ref, o_ref):
    # Feature-major tile: x_ref is (N_FEATURE, tile_b); batch on the lane axis.
    x = x_ref[...].astype(jnp.float32)

    h1 = jnp.dot(w1_ref[...], x, preferred_element_type=jnp.float32) + b1_ref[...]
    h1 = jnp.maximum(h1, 0.0)                                   # (20, tile_b) ReLU

    h2 = jnp.dot(w2_ref[...], h1, preferred_element_type=jnp.float32) + b2_ref[...]
    h2 = jnp.maximum(h2, 0.0)                                   # (12, tile_b) ReLU

    logits = jnp.dot(w3_ref[...], h2, preferred_element_type=jnp.float32) + b3_ref[...]

    # softmax over the class axis (4 sublanes); exact divide -> rows sum to 1.
    m = jnp.max(logits, axis=0, keepdims=True)                  # (1, tile_b)
    e = jnp.exp(logits - m)                                     # (4, tile_b)
    denom = jnp.sum(e, axis=0, keepdims=True)                   # (1, tile_b)
    o_ref[...] = (e / denom).astype(o_ref.dtype)


def bpnet_forward(x, params, *, tile_b_max=TILE_B_MAX, force_two_tiles=True):
    """x: (B, N_FEATURE) f32 or bf16 -> (B, N_OUTPUT) f32 softmax probabilities."""
    w1, b1, w2, b2, w3, b3 = params
    B, F = x.shape
    assert F == N_FEATURE

    # Tile selection: batch lives on lanes -> tile must be a multiple of 128.
    num_tiles = max(pl.cdiv(B, tile_b_max), 1)
    if force_two_tiles and num_tiles < 2 and B >= 2 * LANE:
        num_tiles = 2  # v7x: give both TensorCores work; no-op cost on v5e/v6e
    tile_b = _round_up(pl.cdiv(B, num_tiles), LANE)
    b_pad = num_tiles * tile_b

    # Feature-major (lane-dense) input; padded columns are computed then sliced off.
    xt = x.T                                                    # (N_FEATURE, B)
    if b_pad != B:
        xt = jnp.pad(xt, ((0, 0), (0, b_pad - B)))

    const = lambda i: (0, 0)  # weights/biases: same block every step -> VMEM-resident
    grid_spec = pltpu.PrefetchScalarGridSpec(
        num_scalar_prefetch=0,
        grid=(num_tiles,),
        in_specs=[
            pl.BlockSpec((N_FEATURE, tile_b), lambda i: (0, i)),
            pl.BlockSpec((N_HIDDEN1, N_FEATURE), const),
            pl.BlockSpec((N_HIDDEN1, 1), const),
            pl.BlockSpec((N_HIDDEN2, N_HIDDEN1), const),
            pl.BlockSpec((N_HIDDEN2, 1), const),
            pl.BlockSpec((N_OUTPUT, N_HIDDEN2), const),
            pl.BlockSpec((N_OUTPUT, 1), const),
        ],
        out_specs=pl.BlockSpec((N_OUTPUT, tile_b), lambda i: (0, i)),
    )

    out_t = pl.pallas_call(
        _mlp_softmax_kernel,
        out_shape=jax.ShapeDtypeStruct((N_OUTPUT, b_pad), jnp.float32),
        grid_spec=grid_spec,
        compiler_params=pltpu.CompilerParams(
            dimension_semantics=("parallel",),   # batch axis shards across TCs (v7x)
            vmem_limit_bytes=32 * 1024 * 1024,   # ample & v7x-safe: tiles are tiny now
        ),
    )(xt, w1, b1, w2, b2, w3, b3)

    # Back to PyTorch's (B, n_output). Wrapper-side layout plumbing only; callers that
    # can consume the feature-major (4, B) output should take out_t directly.
    return out_t[:, :B].T


def init_params(key):
    """PyTorch nn.Linear-style init; weights in native (out, in) layout, bias (out, 1)."""
    dims = [(N_FEATURE, N_HIDDEN1), (N_HIDDEN1, N_HIDDEN2), (N_HIDDEN2, N_OUTPUT)]
    params = []
    for fan_in, fan_out in dims:
        key, kw, kb = jax.random.split(key, 3)
        bound = 1.0 / (fan_in ** 0.5)
        w = jax.random.uniform(kw, (fan_out, fan_in), jnp.float32, -bound, bound)
        b = jax.random.uniform(kb, (fan_out, 1), jnp.float32, -bound, bound)
        params.extend([w, b])
    return tuple(params)


def _reference_forward(x, params):
    w1, b1, w2, b2, w3, b3 = params
    h1 = jnp.maximum(x @ w1.T + b1[:, 0], 0.0)
    h2 = jnp.maximum(h1 @ w2.T + b2[:, 0], 0.0)
    return jax.nn.softmax(h2 @ w3.T + b3[:, 0], axis=1)


if __name__ == "__main__":
    key = jax.random.PRNGKey(0)
    key, kx = jax.random.split(key)
    params = init_params(key)

    batch = 300  # not a multiple of 128: exercises lane padding + the >=2-tile split
    x = jax.random.normal(kx, (batch, N_FEATURE), jnp.float32)

    ref = jax.block_until_ready(_reference_forward(x, params))

    # Default: 2 tiles of 256 lanes (both TensorCores get work on v7x).
    out = jax.block_until_ready(bpnet_forward(x, params))
    # Forced small tile budget: 3 pipelined grid steps of 128 lanes.
    out_tiled = jax.block_until_ready(bpnet_forward(x, params, tile_b_max=128))
    # bf16 HBM input (f32 accumulation inside): halves the x DMA traffic.
    out_bf16 = jax.block_until_ready(bpnet_forward(x.astype(jnp.bfloat16), params))

    for o, tol in ((out, 2e-3), (out_tiled, 2e-3), (out_bf16, 2e-2)):
        assert o.shape == (batch, N_OUTPUT)
        assert bool(jnp.all(jnp.isfinite(o)))
        # exact divide in the kernel -> rows sum to 1 to f32 rounding
        assert jnp.allclose(jnp.sum(o, axis=1), 1.0, atol=1e-4)
        assert jnp.allclose(o, ref, atol=tol, rtol=tol)
    print("KERNEL_OK")
</pallas_src>

<mosaic_0001>
module attributes {stable_mosaic.version = 11 : i64} {
  func.func @_mlp_softmax_kernel(%arg0: i32, %arg1: memref<14x256xf32, #tpu.memory_space<vmem>>, %arg2: memref<20x14xf32, #tpu.memory_space<vmem>>, %arg3: memref<20x1xf32, #tpu.memory_space<vmem>>, %arg4: memref<12x20xf32, #tpu.memory_space<vmem>>, %arg5: memref<12x1xf32, #tpu.memory_space<vmem>>, %arg6: memref<4x12xf32, #tpu.memory_space<vmem>>, %arg7: memref<4x1xf32, #tpu.memory_space<vmem>>, %arg8: memref<4x256xf32, #tpu.memory_space<vmem>>) attributes {dimension_semantics = [#tpu.dimension_semantics<parallel>], iteration_bounds = array<i64: 2>, scalar_prefetch = 0 : i64, scratch_operands = 0 : i64, tpu.core_type = #tpu.core_type<tc>, window_params = [{transform_indices = @transform_0, window_bounds = array<i64: 14, 256>}, {pipeline_mode = #tpu.pipeline_mode<synchronous>, transform_indices = @transform_1, window_bounds = array<i64: 20, 14>}, {pipeline_mode = #tpu.pipeline_mode<synchronous>, transform_indices = @transform_2, window_bounds = array<i64: 20, 1>}, {pipeline_mode = #tpu.pipeline_mode<synchronous>, transform_indices = @transform_3, window_bounds = array<i64: 12, 20>}, {pipeline_mode = #tpu.pipeline_mode<synchronous>, transform_indices = @transform_4, window_bounds = array<i64: 12, 1>}, {pipeline_mode = #tpu.pipeline_mode<synchronous>, transform_indices = @transform_5, window_bounds = array<i64: 4, 12>}, {pipeline_mode = #tpu.pipeline_mode<synchronous>, transform_indices = @transform_6, window_bounds = array<i64: 4, 1>}, {transform_indices = @transform_7, window_bounds = array<i64: 4, 256>}]} {
    %c0 = arith.constant 0 : index
    %c0_0 = arith.constant 0 : index
    %0 = vector.load %arg1[%c0, %c0_0] : memref<14x256xf32, #tpu.memory_space<vmem>>, vector<14x256xf32>
    %c0_1 = arith.constant 0 : index
    %c0_2 = arith.constant 0 : index
    %1 = vector.load %arg2[%c0_1, %c0_2] : memref<20x14xf32, #tpu.memory_space<vmem>>, vector<20x14xf32>
    %cst = arith.constant dense<0.000000e+00> : vector<20x256xf32>
    %2 = tpu.matmul %1, %0, %cst {dimension_numbers = #tpu.dot_dimension_numbers<[1], [0], [0], [1], [0, 0, 1, 1], [], []>} : vector<20x14xf32>, vector<14x256xf32>, vector<20x256xf32> -> vector<20x256xf32>
    %c0_3 = arith.constant 0 : index
    %c0_4 = arith.constant 0 : index
    %3 = vector.load %arg3[%c0_3, %c0_4] : memref<20x1xf32, #tpu.memory_space<vmem>>, vector<20x1xf32>
    %4 = vector.broadcast %3 : vector<20x1xf32> to vector<20x256xf32>
    %5 = arith.addf %2, %4 : vector<20x256xf32>
    %cst_5 = arith.constant 0.000000e+00 : f32
    %6 = vector.broadcast %cst_5 : f32 to vector<20x256xf32>
    %7 = arith.maximumf %5, %6 : vector<20x256xf32>
    %c0_6 = arith.constant 0 : index
    %c0_7 = arith.constant 0 : index
    %8 = vector.load %arg4[%c0_6, %c0_7] : memref<12x20xf32, #tpu.memory_space<vmem>>, vector<12x20xf32>
    %cst_8 = arith.constant dense<0.000000e+00> : vector<12x256xf32>
    %9 = tpu.matmul %8, %7, %cst_8 {dimension_numbers = #tpu.dot_dimension_numbers<[1], [0], [0], [1], [0, 0, 1, 1], [], []>} : vector<12x20xf32>, vector<20x256xf32>, vector<12x256xf32> -> vector<12x256xf32>
    %c0_9 = arith.constant 0 : index
    %c0_10 = arith.constant 0 : index
    %10 = vector.load %arg5[%c0_9, %c0_10] : memref<12x1xf32, #tpu.memory_space<vmem>>, vector<12x1xf32>
    %11 = vector.broadcast %10 : vector<12x1xf32> to vector<12x256xf32>
    %12 = arith.addf %9, %11 : vector<12x256xf32>
    %cst_11 = arith.constant 0.000000e+00 : f32
    %13 = vector.broadcast %cst_11 : f32 to vector<12x256xf32>
    %14 = arith.maximumf %12, %13 : vector<12x256xf32>
    %c0_12 = arith.constant 0 : index
    %c0_13 = arith.constant 0 : index
    %15 = vector.load %arg6[%c0_12, %c0_13] : memref<4x12xf32, #tpu.memory_space<vmem>>, vector<4x12xf32>
    %cst_14 = arith.constant dense<0.000000e+00> : vector<4x256xf32>
    %16 = tpu.matmul %15, %14, %cst_14 {dimension_numbers = #tpu.dot_dimension_numbers<[1], [0], [0], [1], [0, 0, 1, 1], [], []>} : vector<4x12xf32>, vector<12x256xf32>, vector<4x256xf32> -> vector<4x256xf32>
    %c0_15 = arith.constant 0 : index
    %c0_16 = arith.constant 0 : index
    %17 = vector.load %arg7[%c0_15, %c0_16] : memref<4x1xf32, #tpu.memory_space<vmem>>, vector<4x1xf32>
    %18 = vector.broadcast %17 : vector<4x1xf32> to vector<4x256xf32>
    %19 = arith.addf %16, %18 : vector<4x256xf32>
    %cst_17 = arith.constant dense<0xFF800000> : vector<256xf32>
    %20 = vector.multi_reduction <maximumf>, %19, %cst_17 [0] : vector<4x256xf32> to vector<256xf32>
    %21 = vector.shape_cast %20 : vector<256xf32> to vector<1x256xf32>
    %22 = vector.broadcast %21 : vector<1x256xf32> to vector<4x256xf32>
    %23 = arith.subf %19, %22 : vector<4x256xf32>
    %24 = math.exp %23 : vector<4x256xf32>
    %cst_18 = arith.constant dense<0.000000e+00> : vector<256xf32>
    %25 = vector.multi_reduction <add>, %24, %cst_18 [0] : vector<4x256xf32> to vector<256xf32>
    %26 = vector.shape_cast %25 : vector<256xf32> to vector<1x256xf32>
    %27 = vector.broadcast %26 : vector<1x256xf32> to vector<4x256xf32>
    %28 = arith.divf %24, %27 : vector<4x256xf32>
    %c0_19 = arith.constant 0 : index
    %c0_20 = arith.constant 0 : index
    %29 = vector.load %arg8[%c0_19, %c0_20] : memref<4x256xf32, #tpu.memory_space<vmem>>, vector<4x256xf32>
    tpu.vector_store %arg8[%c0_19, %c0_20], %28 {strides = array<i32>} : memref<4x256xf32, #tpu.memory_space<vmem>>, vector<4x256xf32>,
    return
  }
  func.func @transform_0(%arg0: i32) -> (i32, i32) {
    %c0_i32 = arith.constant 0 : i32
    %c0_i32_0 = arith.constant 0 : i32
    return %c0_i32, %arg0 : i32, i32
  }
  func.func @transform_1(%arg0: i32) -> (i32, i32) {
    %c0_i32 = arith.constant 0 : i32
    %c0_i32_0 = arith.constant 0 : i32
    %c0_i32_1 = arith.constant 0 : i32
    return %c0_i32, %c0_i32_0 : i32, i32
  }
  func.func @transform_2(%arg0: i32) -> (i32, i32) {
    %c0_i32 = arith.constant 0 : i32
    %c0_i32_0 = arith.constant 0 : i32
    %c0_i32_1 = arith.constant 0 : i32
    return %c0_i32, %c0_i32_0 : i32, i32
  }
  func.func @transform_3(%arg0: i32) -> (i32, i32) {
    %c0_i32 = arith.constant 0 : i32
    %c0_i32_0 = arith.constant 0 : i32
    %c0_i32_1 = arith.constant 0 : i32
    return %c0_i32, %c0_i32_0 : i32, i32
  }
  func.func @transform_4(%arg0: i32) -> (i32, i32) {
    %c0_i32 = arith.constant 0 : i32
    %c0_i32_0 = arith.constant 0 : i32
    %c0_i32_1 = arith.constant 0 : i32
    return %c0_i32, %c0_i32_0 : i32, i32
  }
  func.func @transform_5(%arg0: i32) -> (i32, i32) {
    %c0_i32 = arith.constant 0 : i32
    %c0_i32_0 = arith.constant 0 : i32
    %c0_i32_1 = arith.constant 0 : i32
    return %c0_i32, %c0_i32_0 : i32, i32
  }
  func.func @transform_6(%arg0: i32) -> (i32, i32) {
    %c0_i32 = arith.constant 0 : i32
    %c0_i32_0 = arith.constant 0 : i32
    %c0_i32_1 = arith.constant 0 : i32
    return %c0_i32, %c0_i32_0 : i32, i32
  }
  func.func @transform_7(%arg0: i32) -> (i32, i32) {
    %c0_i32 = arith.constant 0 : i32
    %c0_i32_0 = arith.constant 0 : i32
    return %c0_i32, %arg0 : i32, i32
  }
}

</mosaic_0001>

<bundles_post_ra>
// kernel: tpu_custom_call.1
= control target key start
LH: loop header
LB: loop body
LE: loop exit
PB: predicated region body
PF: predicated region fallthrough
CT: control target
= control target key end

     0   :  { %12 = vsyncpa [#allocation4], 0  ;;  %s1127_s0 = inlined_call_operand.vmem [shape: f32[14,512], index: 0, kind: input, shape index: {}]   ;;  %s1128_s1 = inlined_call_operand.vmem [shape: f32[20,14], index: 1, kind: input, shape index: {}]   ;;  %s1129_s2 = inlined_call_operand.vmem [shape: f32[20,1], index: 2, kind: input, shape index: {}]   ;;  %s1130_s3 = inlined_call_operand.hbm [shape: f32[12,20], index: 3, kind: input, shape index: {}]   ;;  %s1131_s4 = inlined_call_operand.vmem [shape: f32[12,1], index: 4, kind: input, shape index: {}]   ;;  %s1132_s5 = inlined_call_operand.vmem [shape: f32[4,12], index: 5, kind: input, shape index: {}]   ;;  %s1133_s6 = inlined_call_operand.vmem [shape: f32[4,1], index: 6, kind: input, shape index: {}]   ;;  %s1134_s7 = inlined_call_operand.hbm [shape: f32[4,512], index: 7, kind: output, shape index: {}]  }
   0x1   :  { %13 = vsyncpa [#allocation5], 0 }
   0x2   :  { %15 = vsyncpa [#allocation5 + $0x1], 0  ;;  %s963_s24 = smov 0   ;;  %s965_s25 = smov 0  }
   0x3   :  { %s967_s26 = smov 0   ;;  %s969_s27 = smov 0  }
   0x4 LB: > { %s984_s28 = sadd.s32 4294967295, %s917_s27   ;;  %s721_s29 = sadd.s32 4294967294, %s917_s27   ;;  %s917_s27 = sphi %s969_s27, %s1142_s27   ;;  %s913_s26 = sphi %s967_s26, %s1141_s26   ;;  %s909_s25 = sphi %s965_s25, %s1140_s25   ;;  %s905_s24 = sphi %s963_s24, %s1139_s24  }
   0x5   : > { %s988_s30 = sadd.s32 1, %s917_s27   ;;  %s28_s8 = sadd.s32 1, %s913_s26 }
   0x6   : > { %s25_s9 = ssub.s32 %s917_s27, %s988_s30  ;;  %p35_p0 = scmp.ne.s32.totalorder %s913_s26, %s909_s25 }
   0x7   : > { %p26_p1 = scmp.eq.s32.totalorder %s25_s9, 0  ;;  %p36_p2 = scmp.eq.s32.totalorder %s917_s27, 0 }
   0x8   : > { %p191_p3 = scmp.eq.s32.totalorder %s984_s28, 1  ;;  %p196_p4 = scmp.ne.s32.totalorder %s909_s25, %s905_s24 }
   0x9   : > { %s1000_s10 = scalar_select %p26_p1, %s913_s26, %s28_s8  }
   0xa   : > { %p1002_p5 = por %p36_p2, %p35_p0  ;;  %p1006_p6 = por %p191_p3, %p35_p0 }
   0xb   : > { %p197_p7 = scmp.eq.s32.totalorder %s721_s29, 1  ;;  %p722_p8 = scmp.ge.s32.totalorder %s917_s27, 1 }
   0xc   : > { %p204_p9 = scmp.lt.s32.totalorder %s917_s27, 3  ;;  %p771_p11 = scmp.eq.s32.totalorder %s984_s28, 0 }
   0xd   : > { %p1012_p10 = por %p197_p7, %p196_p4  ;;  %s221_s17 = sshll.u32 %s1130_s3, 4  ;;  %s222_s17 = int_to_ptr.hbm [resolvable:$true] %s221_s17 }
   0xe   : > { %p1017_p12 = pnand %p722_p8, %p204_p9  ;;  %s919_s18 = smov [#allocation3]  }
   0xf   : > { %s223_s19 = sshll.u32 %s919_s18, 4  ;;  %s920_s20 = smov 128   ;;  %s224_s19 = int_to_ptr.vmem [resolvable:$true] %s223_s19 }
  0x10   : > { %p763_p13 = pneg %p1017_p12  ;;  %s921_s21 = smov 8  }
  0x11   : > { %p724_p1 = scmp.ge.s32.totalorder %s917_s27, 2 }
  0x12   : > { %p764_p0 = pnand %p771_p11, %p763_p13 }
  0x13   : > { %242 = sbr.rel (%p724_p1) target bundleno = 32 (0x20), region = 40 }
  0x14   : > { %766 = dma.hbm_to_vmem [thread:$0]  (!%p764_p0), %s222_s17, 256, %s224_s19, [#allocation4], %s920_s20, %s920_s20, %s921_s21  }
  0x18   : > { %245 = sbr.rel (!%p1002_p5) target bundleno = 32 (0x20), region = 44  ;;  %s247_s22 = sand.u32 (%p1002_p5), 1, %s913_s26  }
  0x19   : > { %s755_s23 = sshll.u32 (%p1002_p5), %s917_s27, 4  ;;  %s725_s29 = sshll.u32 (%p1002_p5), %s247_s22, 5 }
  0x1a   : > { %s252_s15 = scalar_lea.vmem (%p1002_p5), %s1127_s0, %s755_s23  ;;  %s249_s16 = scalar_lea.vmem (%p1002_p5), [#allocation2], %s725_s29 }
  0x1b   : > { %v265_v0 = vld [vmem:[%s252_s15] sm:$0xff] (%p1002_p5)  ;;  %v267_v1 = vld [vmem:[%s252_s15 + $0x8] sm:$0xff] (%p1002_p5) }
  0x1c   : > { %v269_v2 = vld [vmem:[%s252_s15 + $0x20] sm:$0xff] (%p1002_p5)  ;;  %266 = vst [vmem:[%s249_s16] sm:$0xff] (%p1002_p5), %v265_v0  ;;  %v271_v3 = vld [vmem:[%s252_s15 + $0x28] sm:$0xff] (%p1002_p5) }
  0x1d   : > { %268 = vst [vmem:[%s249_s16 + $0x8] sm:$0xff] %v267_v1 }
  0x1e   : > { %270 = vst [vmem:[%s249_s16 + $0x10] sm:$0xff] %v269_v2 }
  0x1f   : > { %272 = vst [vmem:[%s249_s16 + $0x18] sm:$0xff] %v271_v3 }
  0x20 PF: > { %281 = sbr.rel (%p1017_p12) target bundleno = 538 (0x21a), region = 67  ;;  %s1041_s11 = sand.u32 (!%p1017_p12), 1, %s909_s25  }
  0x21   : > { %s729_s17 = sshll.u32 (!%p1017_p12), %s1041_s11, 5 }
  0x22   : > { %s286_s18 = scalar_lea.vmem (!%p1017_p12), [#allocation2], %s729_s17 }
  0x25   : > { %896 = dma.done.wait (%p771_p11), [#allocation4], 256  }
  0x26   : > { %898 = vsyncadd (%p771_p11), [#allocation4], 4294967040  ;;  %v922_v4 = vmov 0   ;;  %vm357_vm0 = vcmask 1045504   ;;  %v324_v5 = vld [vmem:[%s286_s18 + $0x10] sm:$0x3f] }
  0x27   : > { %811 = vset.pattern.permute.xlu1 %v922_v4  ;;  %810 = vset.pattern.permute.xlu0 %v922_v4  ;;  %v325_v6 = vld [vmem:[%s286_s18 + $0x18] sm:$0x3f]  ;;  %v322_v7 = vld [vmem:[%s286_s18] sm:$0xff]  ;;  %v323_v8 = vld [vmem:[%s286_s18 + $0x8] sm:$0xff]  ;;  %vm347_vm1 = vcmask 113664   ;;  %vm443_vm2 = vcmask 1043456  }
  0x28   : > { %812 = vset.pattern.permute.xlu2 %v922_v4  ;;  %732 = vmatpush.msk.msra.mxu0 %vm357_vm0, %v324_v5  ;;  %v326_v9 = vld [vmem:[%s1128_s1] sm:$0xff]  ;;  %v331_v10 = vld [vmem:[%s1129_s2 + $0x10] sm:$0xf]  ;;  %v327_v12 = vld [vmem:[%s1128_s1 + $0x8] sm:$0xff]  ;;  %vm436_vm3 = vcmask 162816   ;;  %vm507_vm4 = vcmask 97280  }
  0x29   : > { %736 = vmatpush.msk.msra.mxu1 %vm357_vm0, %v325_v6  ;;  %v329_v11 = vld [vmem:[%s1129_s2] sm:$0xff]  ;;  %344 = vperm.xlu0 %810, %v331_v10   ;;  %v330_v13 = vld [vmem:[%s1129_s2 + $0x8] sm:$0xff]  ;;  %v328_v15 = vld [vmem:[%s1128_s1 + $0x10] sm:$0xf]  ;;  %s731_s8 = sshll.u32 %s1041_s11, 3  ;;  %s756_s9 = sshll.u32 %s984_s28, 3 }
  0x2a   : > { %379 = vmatpush.msra.mxu0 %v322_v7  ;;  %334 = vperm.xlu1 %811, %v329_v11   ;;  %v425_v14 = vld [vmem:[%s1131_s4 + $0x8] sm:$0xf]  ;;  %v424_v18 = vld [vmem:[%s1131_s4] sm:$0xff]  ;;  %s639_s17 = scalar_lea.hbm %s1134_s7, %s756_s9  ;;  %s319_s28 = scalar_lea.vmem [#allocation6], %s731_s8 }
  0x2b   : > { %405 = vmatpush.msra.mxu1 %v323_v8  ;;  %733 = vmatmul.msk.f32.vlgmr.msra.gmra.mxu0 %vm347_vm1, %v326_v9  ;;  %v501_v22 = vld [vmem:[%s1133_s6] sm:$0xf]  ;;  %v423_v40 = vld [vmem:[#allocation3 + $0x8] sm:$0xf]  ;;  %s641_s18 = sshll.u32 %s319_s28, 4  ;;  %s643_s14 = sshll.u32 %s639_s17, 4  ;;  %s642_s18 = int_to_ptr.vmem [resolvable:$true] %s641_s18  ;;  %s644_s14 = int_to_ptr.hbm [resolvable:$true] %s643_s14 }
  0x2c   : > { %737 = vmatmul.msk.f32.vlgmr.msra.gmra.mxu1 %vm347_vm1, %v326_v9  ;;  %428 = vperm.xlu2 %812, %v424_v18   ;;  %v422_v39 = vld [vmem:[#allocation3] sm:$0xff]  ;;  %s628_s19 = scalar_lea.sflag [#allocation5], %s1041_s11  ;;  %s865_s20 = sshra.s32 %s644_s14, 4  ;;  %s866_s20 = int_to_ptr.hbm [resolvable:$true] %s865_s20 }
  0x2d   : > { %v500_v55 = vld [vmem:[%s1132_s5] sm:$0xf]  ;;  %s867_s21 = scalar_lea.hbm %s866_s20, 8  ;;  %s871_s29 = scalar_lea.hbm %s1134_s7, 16 }
  0x2e   : > { %p868_p2 = scmp.ne.s32.totalorder %s866_s20, %s867_s21  ;;  %p872_p5 = scmp.lt.s32.totalorder %s866_s20, %s1134_s7 }
  0x2f   : > { %p873_p7 = scmp.lt.s32.totalorder %s871_s29, %s867_s21 }
  0x30   : > { %p869_p3 = pnand %p868_p2, %p1006_p6 }
  0x31   : > { %339 = vperm.xlu0 %810, %v330_v13   ;;  %p874_p8 = por %p873_p7, %p872_p5 }
  0x32   : > { %433 = vperm.xlu1 %811, %v425_v14   ;;  %p870_p4 = pneg %p869_p3 }
  0x33   : > { %734 = vmatmul.msk.f32.gmra.mxu0 %vm347_vm1, %v327_v12 }
  0x34   : > { %738 = vmatmul.msk.f32.gmra.mxu1 %vm347_vm1, %v327_v12  ;;  %504 = vperm.xlu2 %812, %v501_v22   ;;  %p875_p9 = pnand %p874_p8, %p870_p4 }
  0x3b   : > { %735 = vmatmul.msk.f32.gmra.mxu0 %vm347_vm1, %v328_v15 }
  0x3c   : > { %739 = vmatmul.msk.f32.gmra.mxu1 %vm347_vm1, %v328_v15 }
  0x86   : > { %v429_v43 = vpop.permute.xlu2 %428 }
  0x8e   : > { %v505_v56 = vpop.permute.xlu2 %504 }
  0x9b   : > { %v345_v19 = vpop.permute.xlu0 %344 }
  0x9c   : > { %v335_v24 = vpop.permute.xlu1 %334 }
  0xa3   : > { %v340_v23 = vpop.permute.xlu0 %339 }
  0xa4   : > { %v434_v44 = vpop.permute.xlu1 %433 }
  0xa8   : > { %v381_v16 = vpop.f32.mrf.mxu0 }
  0xa9   : > { %v407_v17 = vpop.f32.mrf.mxu1  ;;  %v382_v31 = vadd.f32 %v381_v16, %v335_v24 }
  0xaa   : > { %v408_v32 = vadd.f32 %v407_v17, %v335_v24 }
  0xab   : > { %v416_v37 = vmax.f32 %v382_v31, 0.0 }
  0xac   : > { %v417_v38 = vmax.f32 %v408_v32, 0.0 }
  0xb0   : > { %v384_v20 = vpop.f32.mrf.mxu0 }
  0xb1   : > { %v410_v21 = vpop.f32.mrf.mxu1  ;;  %v385_v27 = vadd.f32 %v384_v20, %v340_v23 }
  0xb2   : > { %v411_v28 = vadd.f32 %v410_v21, %v340_v23 }
  0xb3   : > { %v418_v35 = vmax.f32 %v385_v27, 0.0 }
  0xb4   : > { %v419_v36 = vmax.f32 %v411_v28, 0.0 }
  0xb8   : > { %v387_v25 = vpop.f32.mrf.mxu0 }
  0xb9   : > { %v413_v26 = vpop.f32.mrf.mxu1  ;;  %v388_v29 = vadd.f32 %v387_v25, %v345_v19 }
  0xba   : > { %v414_v30 = vadd.f32 %v413_v26, %v345_v19 }
  0xbb   : > { %v420_v33 = vmax.f32 %v388_v29, 0.0 }
  0xbc   : > { %v421_v34 = vmax.f32 %v414_v30, 0.0 }
  0xbd   : > { %740 = vmatpush.msk.msra.mxu2 %vm443_vm2, %v420_v33 }
  0xbe   : > { %743 = vmatpush.msk.msra.mxu3 %vm443_vm2, %v421_v34 }
  0xbf   : > { %464 = vmatpush.msra.mxu2 %v418_v35 }
  0xc0   : > { %487 = vmatpush.msra.mxu3 %v419_v36 }
  0xc1   : > { %465 = vmatpush.msra.mxu2 %v416_v37 }
  0xc2   : > { %488 = vmatpush.msra.mxu3 %v417_v38  ;;  %741 = vmatmul.msk.f32.vlgmr.msra.gmra.mxu2 %vm436_vm3, %v422_v39 }
  0xc3   : > { %744 = vmatmul.msk.f32.vlgmr.msra.gmra.mxu3 %vm436_vm3, %v422_v39 }
  0xca   : > { %742 = vmatmul.msk.f32.gmra.mxu2 %vm436_vm3, %v423_v40 }
  0xcb   : > { %745 = vmatmul.msk.f32.gmra.mxu3 %vm436_vm3, %v423_v40 }
 0x145   : > { %v467_v41 = vpop.f32.mrf.mxu2 }
 0x146   : > { %v490_v42 = vpop.f32.mrf.mxu3  ;;  %v468_v47 = vadd.f32 %v467_v41, %v429_v43 }
 0x147   : > { %v491_v48 = vadd.f32 %v490_v42, %v429_v43 }
 0x148   : > { %v496_v53 = vmax.f32 %v468_v47, 0.0 }
 0x149   : > { %v497_v54 = vmax.f32 %v491_v48, 0.0 }
 0x14d   : > { %v470_v45 = vpop.f32.mrf.mxu2 }
 0x14e   : > { %v493_v46 = vpop.f32.mrf.mxu3  ;;  %v471_v49 = vadd.f32 %v470_v45, %v434_v44 }
 0x14f   : > { %v494_v50 = vadd.f32 %v493_v46, %v434_v44 }
 0x150   : > { %v498_v51 = vmax.f32 %v471_v49, 0.0 }
 0x151   : > { %v499_v52 = vmax.f32 %v494_v50, 0.0 }
 0x152   : > { %746 = vmatpush.msk.msrb.mxu2 %vm443_vm2, %v498_v51 }
 0x153   : > { %748 = vmatpush.msk.msrb.mxu3 %vm443_vm2, %v499_v52 }
 0x154   : > { %532 = vmatpush.msrb.mxu2 %v496_v53 }
 0x155   : > { %552 = vmatpush.msrb.mxu3 %v497_v54  ;;  %747 = vmatmul.msk.f32.vlgmr.msrb.gmra.mxu2 %vm507_vm4, %v500_v55 }
 0x156   : > { %749 = vmatmul.msk.f32.vlgmr.msrb.gmra.mxu3 %vm507_vm4, %v500_v55 }
 0x1d8   : > { %v534_v57 = vpop.f32.mrf.mxu2 }
 0x1d9   : > { %v554_v58 = vpop.f32.mrf.mxu3  ;;  %v535_v59 = vadd.f32 %v534_v57, %v505_v56 }
 0x1da   : > { %v555_v60 = vadd.f32 %v554_v58, %v505_v56 }
 0x1db   : > { %v557_v61 = vsel %vm443_vm2, %v535_v59, -inf }
 0x1dc   : > { %v564_v62 = vsel %vm443_vm2, %v555_v60, -inf  ;;  %v558_v63 = vrot.slane %v557_v61, 4 }
 0x1dd   : > { %v565_v0 = vrot.slane %v564_v62, 4 }
 0x1de   : > { %v559_v1 = vmax.f32 %v557_v61, %v558_v63 }
 0x1df   : > { %v566_v2 = vmax.f32 %v564_v62, %v565_v0 }
 0x1e0   : > { %v560_v3 = vrot.slane %v559_v1, 2 }
 0x1e1   : > { %v567_v4 = vrot.slane %v566_v2, 2 }
 0x1e2   : > { %v561_v5 = vmax.f32 %v559_v1, %v560_v3 }
 0x1e3   : > { %v568_v6 = vmax.f32 %v566_v2, %v567_v4 }
 0x1e4   : > { %v562_v7 = vrot.slane %v561_v5, 1 }
 0x1e5   : > { %v569_v8 = vrot.slane %v568_v6, 1 }
 0x1e6   : > { %v563_v9 = vmax.f32 %v561_v5, %v562_v7 }
 0x1e7   : > { %v570_v10 = vmax.f32 %v568_v6, %v569_v8 }
 0x1e8   : > { %v571_v11 = vsub.f32 %v535_v59, %v563_v9 }
 0x1e9   : > { %v572_v12 = vsub.f32 %v555_v60, %v570_v10 }
 0x1ea   : > { %v573_v13 = vmul.f32 1.442695, %v571_v11 }
 0x1eb   : > { %v575_v14 = vmul.f32 1.442695, %v572_v12 }
 0x1ec   : > { %813 = vpow2.f32 %v573_v13 }
 0x1ed   : > { %815 = vpow2.f32 %v575_v14 }
 0x1f2   : > { %v814_v15 = vpop.eup %813 }
 0x1f3   : > { %v816_v16 = vpop.eup %815  ;;  %v577_v17 = vsel %vm443_vm2, %v814_v15, 0.0 }
 0x1f4   : > { %v578_v18 = vrot.slane %v577_v17, 4  ;;  %v584_v19 = vsel %vm443_vm2, %v816_v16, 0.0 }
 0x1f5   : > { %v585_v20 = vrot.slane %v584_v19, 4 }
 0x1f6   : > { %v579_v21 = vadd.f32 %v578_v18, %v577_v17 }
 0x1f7   : > { %v586_v22 = vadd.f32 %v585_v20, %v584_v19 }
 0x1f8   : > { %v580_v23 = vrot.slane %v579_v21, 2 }
 0x1f9   : > { %v587_v24 = vrot.slane %v586_v22, 2 }
 0x1fa   : > { %v581_v25 = vadd.f32 %v580_v23, %v579_v21 }
 0x1fb   : > { %v588_v26 = vadd.f32 %v587_v24, %v586_v22 }
 0x1fc   : > { %v582_v27 = vrot.slane %v581_v25, 1 }
 0x1fd   : > { %v589_v28 = vrot.slane %v588_v26, 1 }
 0x1fe   : > { %v583_v29 = vadd.f32 %v582_v27, %v581_v25 }
 0x1ff   : > { %v590_v30 = vadd.f32 %v589_v28, %v588_v26 }
 0x200   : > { %817 = vrcp.f32 %v583_v29  ;;  %v602_v38 = vand.u32 2147483648, %v583_v29  ;;  %v600_v40 = vand.u32 2147483647, %v583_v29  ;;  %vm596_vm7 = vweird.f32 %v583_v29 }
 0x201   : > { %819 = vrcp.f32 %v590_v30  ;;  %v617_v39 = vand.u32 2147483648, %v590_v30  ;;  %v615_v42 = vand.u32 2147483647, %v590_v30  ;;  %vm611_vm9 = vweird.f32 %v590_v30 }
 0x202   : > { %v603_v46 = vor.u32 1.1754944e-38, %v602_v38  ;;  %vm601_vm11 = vcmp.eq.f32.partialorder %v600_v40, 8.507059e+37 }
 0x203   : > { %v618_v47 = vor.u32 1.1754944e-38, %v617_v39  ;;  %vm616_vm12 = vcmp.eq.f32.partialorder %v615_v42, 8.507059e+37 }
 0x206   : > { %v818_v31 = vpop.eup %817 }
 0x207   : > { %v820_v32 = vpop.eup %819  ;;  %v592_v33 = vmul.f32 %v818_v31, %v583_v29  ;;  %vm597_vm5 = vweird.f32 %v818_v31 }
 0x208   : > { %v607_v34 = vmul.f32 %v820_v32, %v590_v30  ;;  %vm612_vm6 = vweird.f32 %v820_v32  ;;  %vm598_vm8 = vmor %vm596_vm7, %vm597_vm5 }
 0x209   : > { %v593_v35 = vsub.f32 1.0, %v592_v33  ;;  %vm613_vm10 = vmor %vm611_vm9, %vm612_vm6 }
 0x20a   : > { %v608_v36 = vsub.f32 1.0, %v607_v34 }
 0x20b   : > { %v594_v37 = vmul.f32 %v818_v31, %v593_v35 }
 0x20c   : > { %v609_v41 = vmul.f32 %v820_v32, %v608_v36 }
 0x20d   : > { %v595_v43 = vadd.f32 %v818_v31, %v594_v37 }
 0x20e   : > { %v610_v44 = vadd.f32 %v820_v32, %v609_v41 }
 0x20f   : > { %v599_v45 = vsel %vm598_vm8, %v818_v31, %v595_v43 }
 0x210   : > { %v614_v48 = vsel %vm613_vm10, %v820_v32, %v610_v44  ;;  %v604_v49 = vsel %vm601_vm11, %v603_v46, %v599_v45 }
 0x211   : > { %v619_v50 = vsel %vm616_vm12, %v618_v47, %v614_v48  ;;  %v605_v52 = vmul.f32 %v814_v15, %v604_v49 }
 0x212   : > { %v620_v51 = vmul.f32 %v816_v16, %v619_v50 }
 0x214   : > { %v623_v53 = vrot.slane %v620_v51, 4 }
 0x216   : > { %v624_v54 = vsel %vm443_vm2, %v605_v52, %v623_v53 }
 0x217   : > { %626 = vst [vmem:[%s319_s28] sm:$0xff] %v624_v54 }
 0x218   : > { %878 = shalt.err (!%p875_p9)
}
 0x219   : > { %761 = dma.vmem_to_hbm [thread:$0]  (%p1006_p6), %s642_s18, 128, %s644_s14, %s628_s19  }
 0x21a PF: > { %s655_s11 = sand.u32 1, %s905_s24   ;;  %p768_p11 = pnand %p724_p1, %p1012_p10 }
 0x21b   : > { %s656_s15 = scalar_lea.sflag [#allocation5], %s655_s11 }
 0x21c   : > { %p769_p12 = pneg %p768_p11 }
 0x21e   : > { %900 = dma.done.wait (%p769_p12), %s656_s15, 128  }
 0x21f   : > { %902 = vsyncadd (%p769_p12), %s656_s15, 4294967168  ;;  %p18_p13 = scmp.ge.s32.totalorder %s988_s30, 4   ;;  %s1139_s24 = smov %s909_s25 }
 0x220   : > { %s1140_s25 = smov %s913_s26  ;;  %s1141_s26 = smov %s1000_s10 }
 0x221   : > { %s1142_s27 = smov %s988_s30  ;;  %20 = sbr.rel (!%p18_p13) target bundleno = 4 (0x4), region = 116 }
 0x226   :  { %662 = vsyncpa [#allocation4], 1 }
 0x227   :  { %664 = vsyncpa [#allocation4 + $0x1], 1 }
 0x228   :  { %665 = vsyncpa [#allocation5], 1 }
 0x229   :  { %667 = vsyncpa [#allocation5 + $0x1], 1 }

</bundles_post_ra>
